<compile_context>
chip_gen: v5e
topology: v5e:2x2
jax: 0.10.0
libtpu: 0.0.40
codegen_flags: <defaults>
</compile_context>

<pallas_src>
import functools
import math

import jax
import jax.numpy as jnp
from jax.experimental import pallas as pl
from jax.experimental.pallas import tpu as pltpu


def _round_up(x: int, m: int) -> int:
    return (x + m - 1) // m * m


def _pick_tile(dim_padded: int, cap: int) -> int:
    """Largest multiple of 128 that divides dim_padded and is <= cap (>=128)."""
    best = 128
    t = 128
    limit = min(dim_padded, cap)
    while t <= limit:
        if dim_padded % t == 0:
            best = t
        t += 128
    return best


def _sublane_multiple(itemsize: int) -> int:
    return {4: 8, 2: 16, 1: 32}.get(itemsize, 8)


def _select_tiles(M, Np, Kp, itemsize, *, tm_cap=256, tn_cap=512,
                  tk_cap=1024, tk_collapse=2048, budget=14 << 20):
    sub = _sublane_multiple(itemsize)
    tm = min(tm_cap, _round_up(M, sub))
    # Collapse the K reduction axis entirely when the whole K fits one block.
    tk = Kp if Kp <= tk_collapse else _pick_tile(Kp, tk_cap)
    tn = _pick_tile(Np, tn_cap)

    def fits(tm_, tn_, tk_):
        nk = Kp // tk_
        acc = tm_ * tn_ * 4 if nk > 1 else 0
        dbl = 2 * (tm_ * tk_ + tk_ * tn_ + tm_ * tn_) * itemsize + 2 * tn_ * 4
        return dbl + acc <= budget

    # Safety shrink loop (rarely triggered with the caps above).
    while not fits(tm, tn, tk):
        if tk > 128:
            tk = _pick_tile(Kp, max(128, tk // 2))
        elif tn > 128:
            tn = _pick_tile(Np, max(128, tn // 2))
        elif tm > sub:
            tm = max(sub, tm // 2)
        else:
            break
    return tm, tn, tk


# ---------------------------------------------------------------------------
# Kernels
# ---------------------------------------------------------------------------

def _eqlin_kernel_single_k(x_ref, w_ref, b_ref, o_ref, *, scale):
    """Whole K in one block: single MXU pass, direct store. No accumulator."""
    acc = jnp.dot(x_ref[...], w_ref[...], preferred_element_type=jnp.float32)
    o_ref[...] = ((acc + b_ref[...].astype(jnp.float32)) * scale).astype(o_ref.dtype)


def _eqlin_kernel_multi_k(x_ref, w_ref, b_ref, o_ref, acc_ref, *, scale):
    """K split over grid axis 2: f32 VMEM accumulator, epilogue folds bias+scale."""
    k = pl.program_id(2)

    @pl.when(k == 0)
    def _():
        acc_ref[...] = jnp.zeros_like(acc_ref)

    acc_ref[...] += jnp.dot(x_ref[...], w_ref[...],
                            preferred_element_type=jnp.float32)

    @pl.when(k == pl.num_programs(2) - 1)
    def _():
        y = (acc_ref[...] + b_ref[...].astype(jnp.float32)) * scale
        o_ref[...] = y.astype(o_ref.dtype)


# ---------------------------------------------------------------------------
# Wrappers
# ---------------------------------------------------------------------------

def prepare_constrained_linear_params(weight, bias, *, lr_mul: float = 1.0):
    """One-time parameter prep (cache the result across forward calls):
    transpose W to (K, N), pad to lane multiples, compute the equalized-lr scale."""
    N, K = weight.shape
    fan_in = int(math.prod(weight.shape[1:]))
    scale = math.sqrt(2.0 / fan_in) * lr_mul

    Kp, Np = _round_up(K, 128), _round_up(N, 128)
    w_t = weight.T                                    # (K, N): MXU sees a plain RHS
    if (Kp, Np) != (K, N):
        w_t = jnp.pad(w_t, ((0, Kp - K), (0, Np - N)))
    b_row = bias.reshape(1, N)
    if Np != N:
        b_row = jnp.pad(b_row, ((0, 0), (0, Np - N)))
    return {"w_t": w_t, "b": b_row, "scale": scale, "n": N, "k": K}


def apply_constrained_linear(x, params, *, tk_collapse: int = 2048):
    w_t = params["w_t"]          # (Kp, Np)
    b_row = params["b"]          # (1, Np)
    scale = params["scale"]
    N, K = params["n"], params["k"]
    Kp, Np = w_t.shape

    orig_shape = x.shape
    assert orig_shape[-1] == K, "x last dim must match weight in_features"
    x2 = x.reshape(-1, K)
    M = x2.shape[0]
    itemsize = jnp.dtype(x.dtype).itemsize

    tm, tn, tk = _select_tiles(M, Np, Kp, itemsize, tk_collapse=tk_collapse)
    Mp = _round_up(M, tm)

    # Single-block grid (small batch + one N block): split N so a second
    # TensorCore (v7x megacore) gets parallel work.
    if Mp // tm == 1 and Np // tn == 1 and Np >= 256 and Np % 256 == 0:
        tn = Np // 2

    # Per-call padding touches only the activation; K pad is 0 when K % 128 == 0.
    x_p = x2 if (Mp, Kp) == (M, K) else jnp.pad(x2, ((0, Mp - M), (0, Kp - K)))

    nk = Kp // tk
    grid_i, grid_j = Mp // tm, Np // tn

    if nk == 1:
        kernel = functools.partial(_eqlin_kernel_single_k, scale=scale)
        grid = (grid_i, grid_j)
        in_specs = [
            pl.BlockSpec((tm, tk), lambda i, j: (i, 0)),   # x
            pl.BlockSpec((tk, tn), lambda i, j: (0, j)),   # W^T (K, N)
            pl.BlockSpec((1, tn), lambda i, j: (0, j)),    # bias
        ]
        out_specs = pl.BlockSpec((tm, tn), lambda i, j: (i, j))
        scratch = []
        dims = ("parallel", "parallel")
    else:
        kernel = functools.partial(_eqlin_kernel_multi_k, scale=scale)
        grid = (grid_i, grid_j, nk)
        in_specs = [
            pl.BlockSpec((tm, tk), lambda i, j, k: (i, k)),   # x
            pl.BlockSpec((tk, tn), lambda i, j, k: (k, j)),   # W^T (K, N)
            pl.BlockSpec((1, tn), lambda i, j, k: (0, j)),    # bias
        ]
        out_specs = pl.BlockSpec((tm, tn), lambda i, j, k: (i, j))
        scratch = [pltpu.VMEM((tm, tn), jnp.float32)]
        dims = ("parallel", "parallel", "arbitrary")

    out = pl.pallas_call(
        kernel,
        out_shape=jax.ShapeDtypeStruct((Mp, Np), x.dtype),
        grid_spec=pltpu.PrefetchScalarGridSpec(
            num_scalar_prefetch=0,
            grid=grid,
            in_specs=in_specs,
            out_specs=out_specs,
            scratch_shapes=scratch,
        ),
        compiler_params=pltpu.CompilerParams(
            dimension_semantics=dims,
            vmem_limit_bytes=32 << 20,
        ),
    )(x_p, w_t, b_row)

    if (Mp, Np) != (M, N):
        out = out[:M, :N]
    return out.reshape(*orig_shape[:-1], N)


def constrained_linear(x, weight, bias, *, lr_mul: float = 1.0,
                       tk_collapse: int = 2048):
    """ConstrainedLayer(nn.Linear) forward: (x @ W^T + b) * sqrt(2/fan_in) * lrMul.

    In a real model call `prepare_constrained_linear_params` once and reuse the
    result; this convenience wrapper does both steps for a single call.
    """
    params = prepare_constrained_linear_params(weight, bias, lr_mul=lr_mul)
    return apply_constrained_linear(x, params, tk_collapse=tk_collapse)


def _reference(x, weight, bias, lr_mul=1.0):
    fan_in = int(math.prod(weight.shape[1:]))
    scale = math.sqrt(2.0 / fan_in) * lr_mul
    return (x @ weight.T + bias) * scale


if __name__ == "__main__":
    key = jax.random.PRNGKey(0)
    kx, kw, kx2, kw2 = jax.random.split(key, 4)

    # Small shapes consistent with the module: batch=2, hidden (in)=32, out=32.
    batch, in_features, out_features = 2, 32, 32
    lr_mul = 1.0

    x = jax.random.normal(kx, (batch, in_features), dtype=jnp.float32)
    # ConstrainedLayer __init__: bias.fill_(0); weight ~ N(0, 1) / lrMul
    weight = jax.random.normal(kw, (out_features, in_features), dtype=jnp.float32) / lr_mul
    bias = jnp.zeros((out_features,), dtype=jnp.float32)

    y = constrained_linear(x, weight, bias, lr_mul=lr_mul)
    y = jax.block_until_ready(y)
    y_ref = _reference(x, weight, bias, lr_mul)
    assert y.shape == y_ref.shape and y.dtype == x.dtype
    assert jnp.allclose(y, y_ref, atol=1e-5, rtol=1e-5)

    # Exercise the K-reduction (3-D grid) path with still-small shapes by forcing
    # the collapse threshold below K.
    b2, k2, n2 = 16, 256, 96
    x_b = jax.random.normal(kx2, (b2, k2), dtype=jnp.float32)
    w_b = jax.random.normal(kw2, (n2, k2), dtype=jnp.float32) / lr_mul
    bias_b = jnp.zeros((n2,), dtype=jnp.float32)
    y_b = constrained_linear(x_b, w_b, bias_b, lr_mul=lr_mul, tk_collapse=128)
    y_b = jax.block_until_ready(y_b)
    y_b_ref = _reference(x_b, w_b, bias_b, lr_mul)
    assert y_b.shape == y_b_ref.shape
    assert jnp.allclose(y_b, y_b_ref, atol=1e-4, rtol=1e-5)

    print("KERNEL_OK")
</pallas_src>

<mosaic_0001>
module attributes {stable_mosaic.version = 11 : i64} {
  func.func @_eqlin_kernel_single_k(%arg0: i32, %arg1: i32, %arg2: memref<8x128xf32, #tpu.memory_space<vmem>>, %arg3: memref<128x128xf32, #tpu.memory_space<vmem>>, %arg4: memref<1x128xf32, #tpu.memory_space<vmem>>, %arg5: memref<8x128xf32, #tpu.memory_space<vmem>>) attributes {dimension_semantics = [#tpu.dimension_semantics<parallel>, #tpu.dimension_semantics<parallel>], iteration_bounds = array<i64: 1, 1>, scalar_prefetch = 0 : i64, scratch_operands = 0 : i64, tpu.core_type = #tpu.core_type<tc>, window_params = [{transform_indices = @transform_0, window_bounds = array<i64: 8, 128>}, {transform_indices = @transform_1, window_bounds = array<i64: 128, 128>}, {transform_indices = @transform_2, window_bounds = array<i64: 1, 128>}, {transform_indices = @transform_3, window_bounds = array<i64: 8, 128>}]} {
    %c0 = arith.constant 0 : index
    %c0_0 = arith.constant 0 : index
    %0 = vector.load %arg2[%c0, %c0_0] : memref<8x128xf32, #tpu.memory_space<vmem>>, vector<8x128xf32>
    %c0_1 = arith.constant 0 : index
    %c0_2 = arith.constant 0 : index
    %1 = vector.load %arg3[%c0_1, %c0_2] : memref<128x128xf32, #tpu.memory_space<vmem>>, vector<128x128xf32>
    %cst = arith.constant dense<0.000000e+00> : vector<8x128xf32>
    %2 = tpu.matmul %0, %1, %cst {dimension_numbers = #tpu.dot_dimension_numbers<[1], [0], [0], [1], [0, 0, 1, 1], [], []>} : vector<8x128xf32>, vector<128x128xf32>, vector<8x128xf32> -> vector<8x128xf32>
    %c0_3 = arith.constant 0 : index
    %c0_4 = arith.constant 0 : index
    %3 = vector.load %arg4[%c0_3, %c0_4] : memref<1x128xf32, #tpu.memory_space<vmem>>, vector<1x128xf32>
    %4 = vector.broadcast %3 : vector<1x128xf32> to vector<8x128xf32>
    %5 = arith.addf %2, %4 : vector<8x128xf32>
    %cst_5 = arith.constant 2.500000e-01 : f32
    %6 = vector.broadcast %cst_5 : f32 to vector<8x128xf32>
    %7 = arith.mulf %5, %6 : vector<8x128xf32>
    %c0_6 = arith.constant 0 : index
    %c0_7 = arith.constant 0 : index
    %8 = vector.load %arg5[%c0_6, %c0_7] : memref<8x128xf32, #tpu.memory_space<vmem>>, vector<8x128xf32>
    tpu.vector_store %arg5[%c0_6, %c0_7], %7 {strides = array<i32>} : memref<8x128xf32, #tpu.memory_space<vmem>>, vector<8x128xf32>,
    return
  }
  func.func @transform_0(%arg0: i32, %arg1: i32) -> (i32, i32) {
    %c0_i32 = arith.constant 0 : i32
    %c0_i32_0 = arith.constant 0 : i32
    return %arg0, %c0_i32 : i32, i32
  }
  func.func @transform_1(%arg0: i32, %arg1: i32) -> (i32, i32) {
    %c0_i32 = arith.constant 0 : i32
    %c0_i32_0 = arith.constant 0 : i32
    return %c0_i32, %arg1 : i32, i32
  }
  func.func @transform_2(%arg0: i32, %arg1: i32) -> (i32, i32) {
    %c0_i32 = arith.constant 0 : i32
    %c0_i32_0 = arith.constant 0 : i32
    return %c0_i32, %arg1 : i32, i32
  }
  func.func @transform_3(%arg0: i32, %arg1: i32) -> (i32, i32) {
    %c0_i32 = arith.constant 0 : i32
    return %arg0, %arg1 : i32, i32
  }
}

</mosaic_0001>

<bundles_post_ra>
// kernel: tpu_custom_call.1
= control target key start
LH: loop header
LB: loop body
LE: loop exit
PB: predicated region body
PF: predicated region fallthrough
CT: control target
= control target key end

     0   :  { %8 = vsyncpa [#allocation3], 0  ;;  %s227_s0 = inlined_call_operand.hbm [shape: f32[8,128], index: 0, kind: input, shape index: {}]   ;;  %s228_s1 = inlined_call_operand.hbm [shape: f32[128,128], index: 1, kind: input, shape index: {}]   ;;  %s229_s2 = inlined_call_operand.vmem [shape: f32[1,128], index: 2, kind: input, shape index: {}]   ;;  %s230_s3 = inlined_call_operand.hbm [shape: f32[8,128], index: 3, kind: output, shape index: {}]  }
   0x1   :  { %9 = vsyncpa [#allocation6], 0 }
   0x2   :  { %10 = vsyncpa [#allocation4], 0  ;;  %s16_s14 = sshll.u32 %s227_s0, 4  ;;  %s190_s15 = smov [#allocation2]   ;;  %s17_s14 = int_to_ptr.hbm [resolvable:$true] %s16_s14 }
   0x3   :  { %s18_s16 = sshll.u32 %s190_s15, 4  ;;  %s26_s19 = sshll.u32 %s228_s1, 4  ;;  %s19_s16 = int_to_ptr.vmem [resolvable:$true] %s18_s16  ;;  %s27_s19 = int_to_ptr.hbm [resolvable:$true] %s26_s19 }
   0x4   :  { %21 = dma.hbm_to_vmem [thread:$0]  %s17_s14, 128, %s19_s16, [#allocation3]  }
   0x5   :  { %s191_s20 = smov [#allocation5]   ;;  %s192_s22 = smov 128  }
   0x6   :  { %s28_s21 = sshll.u32 %s191_s20, 4  ;;  %s193_s23 = smov 8   ;;  %s29_s21 = int_to_ptr.vmem [resolvable:$true] %s28_s21 }
   0x7   :  { %34 = dma.hbm_to_vmem [thread:$0]  %s27_s19, 2048, %s29_s21, [#allocation6], %s192_s22, %s192_s22, %s193_s23  }
   0x8   :  { %184 = dma.done.wait [#allocation3], 128  }
   0x9   :  { %185 = vsyncadd [#allocation3], 4294967168 }
   0xa   :  { %186 = dma.done.wait [#allocation6], 2048  }
   0xb   :  { %187 = vsyncadd [#allocation6], 4294965248  ;;  %v61_v0 = vld [vmem:[#allocation5 + $0x78] sm:$0xff]  ;;  %v60_v1 = vld [vmem:[#allocation5 + $0x70] sm:$0xff]  ;;  %s194_s24 = smov [#allocation7]   ;;  %s95_s28 = sshll.u32 %s230_s3, 4  ;;  %s96_s28 = int_to_ptr.hbm [resolvable:$true] %s95_s28 }
   0xc   :  { %66 = vmatpush.msra.mxu0 %v61_v0  ;;  %v59_v2 = vld [vmem:[#allocation5 + $0x68] sm:$0xff]  ;;  %v58_v3 = vld [vmem:[#allocation5 + $0x60] sm:$0xff]  ;;  %v57_v4 = vld [vmem:[#allocation5 + $0x58] sm:$0xff]  ;;  %s93_s25 = sshll.u32 %s194_s24, 4  ;;  %s94_s25 = int_to_ptr.vmem [resolvable:$true] %s93_s25 }
   0xd   :  { %v56_v5 = vld [vmem:[#allocation5 + $0x50] sm:$0xff]  ;;  %v55_v6 = vld [vmem:[#allocation5 + $0x48] sm:$0xff]  ;;  %v54_v7 = vld [vmem:[#allocation5 + $0x40] sm:$0xff] }
   0xe   :  { %67 = vmatpush.msra.mxu0 %v60_v1  ;;  %v53_v8 = vld [vmem:[#allocation5 + $0x38] sm:$0xff]  ;;  %v52_v9 = vld [vmem:[#allocation5 + $0x30] sm:$0xff]  ;;  %v51_v10 = vld [vmem:[#allocation5 + $0x28] sm:$0xff] }
   0xf   :  { %v50_v11 = vld [vmem:[#allocation5 + $0x20] sm:$0xff]  ;;  %v49_v12 = vld [vmem:[#allocation5 + $0x18] sm:$0xff]  ;;  %v48_v13 = vld [vmem:[#allocation5 + $0x10] sm:$0xff] }
  0x10   :  { %68 = vmatpush.msra.mxu0 %v59_v2  ;;  %v47_v14 = vld [vmem:[#allocation5 + $0x8] sm:$0xff]  ;;  %v46_v15 = vld [vmem:[#allocation5] sm:$0xff]  ;;  %v45_v16 = vld [vmem:[#allocation2] sm:$0xff] }
  0x11   :  { %v111_v17 = vld [vmem:[%s229_s2] ss:$0 sm:$0xff] }
  0x12   :  { %69 = vmatpush.msra.mxu0 %v58_v3 }
  0x14   :  { %70 = vmatpush.msra.mxu0 %v57_v4 }
  0x16   :  { %71 = vmatpush.msra.mxu0 %v56_v5 }
  0x18   :  { %72 = vmatpush.msra.mxu0 %v55_v6 }
  0x1a   :  { %73 = vmatpush.msra.mxu0 %v54_v7 }
  0x1c   :  { %74 = vmatpush.msra.mxu0 %v53_v8 }
  0x1e   :  { %75 = vmatpush.msra.mxu0 %v52_v9 }
  0x20   :  { %76 = vmatpush.msra.mxu0 %v51_v10 }
  0x22   :  { %77 = vmatpush.msra.mxu0 %v50_v11 }
  0x24   :  { %78 = vmatpush.msra.mxu0 %v49_v12 }
  0x26   :  { %79 = vmatpush.msra.mxu0 %v48_v13 }
  0x28   :  { %80 = vmatpush.msra.mxu0 %v47_v14 }
  0x2a   :  { %81 = vmatpush.msra.mxu0 %v46_v15 }
  0x2b   :  { %82 = vmatmul.f32.vlgmr.msra.gmra.mxu0 %v45_v16 }
  0xa8   :  { %v83_v18 = vpop.f32.mrf.mxu0 }
  0xa9   :  { %v84_v19 = vadd.f32 %v111_v17, %v83_v18 }
  0xab   :  { %v86_v20 = vmul.f32 0.25, %v84_v19 }
  0xad   :  { %87 = vst [vmem:[#allocation7] sm:$0xff] %v86_v20 }
  0xae   :  { %98 = dma.vmem_to_hbm [thread:$0]  %s94_s25, 128, %s96_s28, [#allocation4]  }
  0xaf   :  { %188 = dma.done.wait [#allocation4], 128  }
  0xb0   :  { %189 = vsyncadd [#allocation4], 4294967168 }
  0xb1   :  { %103 = vsyncpa [#allocation3], 1 }
  0xb2   :  { %104 = vsyncpa [#allocation6], 1 }
  0xb3   :  { %105 = vsyncpa [#allocation4], 1 }

</bundles_post_ra>
